<compile_context>
chip_gen: v7x
topology: tpu7x:2x2x1
jax: 0.10.0
libtpu: 0.0.40
codegen_flags: <defaults>
</compile_context>

<pallas_src>
import functools

import jax
import jax.numpy as jnp
from jax.experimental import pallas as pl
from jax.experimental.pallas import tpu as pltpu


def _round_up(x, m):
    return ((x + m - 1) // m) * m


def _classifier_kernel(x_ref, w1_ref, b1_ref, w2t_ref, b2t_ref, out_ref, *,
                       transposed_first):
    """One (tm, D) token tile -> (1, 1, tm) argmax indices (lane-dense)."""
    x = x_ref[...]                                          # (TM, D) f32

    if transposed_first:
        # Small feat_dim: stream only H rows through the MXU instead of TM rows.
        #   h_t (H, TM) = W1^T (H, D) . x (TM, D)   [contract D on both -> NT]
        h_t = jax.lax.dot_general(
            w1_ref[...], x,
            dimension_numbers=(((1,), (1,)), ((), ())),
            preferred_element_type=jnp.float32)
        h_t = jnp.tanh(h_t + b1_ref[...])                   # b1 is (H, 1), f32 EUP/VPU
        #   logits_t (V, TM) = W2^T (V, H) . h_t (H, TM)    [plain NN contraction]
        logits_t = jax.lax.dot_general(
            w2t_ref[...], h_t,
            dimension_numbers=(((1,), (0,)), ((), ())),
            preferred_element_type=jnp.float32) + b2t_ref[...]
    else:
        # Large feat_dim: conventional orientation (good MXU row utilization).
        h = jnp.tanh(
            jnp.dot(x, w1_ref[...], preferred_element_type=jnp.float32)
            + b1_ref[...])                                  # b1 is (1, H)
        #   logits_t (V, TM) = W2^T (V, H) . h (TM, H)      [NT on H]
        logits_t = jax.lax.dot_general(
            w2t_ref[...], h,
            dimension_numbers=(((1,), (1,)), ((), ())),
            preferred_element_type=jnp.float32) + b2t_ref[...]

    V, tm = logits_t.shape

    # Single-pass running argmax over the (small) class axis; tokens stay on lanes
    # so compares/selects are lane-parallel with no XLU reductions.
    # Strict ">" reproduces torch.argmax first-index tie-breaking.
    best_val = logits_t[0:1, :]                             # (1, TM)
    best_idx = jnp.zeros((1, tm), jnp.int32)
    for v in range(1, V):
        val = logits_t[v:v + 1, :]
        take = val > best_val
        best_val = jnp.where(take, val, best_val)
        best_idx = jnp.where(take, jnp.int32(v), best_idx)

    out_ref[...] = best_idx.reshape(1, 1, tm)               # lane-dense full-block store


def _pick_tm(M, D):
    """Adaptive M-tile: ~2 MiB of (lane-padded) feats per step, >= ~4 grid steps."""
    row_bytes = 4 * _round_up(D, 128)                       # f32 row, padded to 128 lanes
    tm = max(512, ((2 << 20) // row_bytes) // 512 * 512)    # ~2 MiB feats tile
    tm = min(tm, 8192)
    tm = min(tm, max(128, (M // 4) // 128 * 128))           # keep >=4 steps (2 per v7x TC)
    tm = min(tm, _round_up(M, 128))                         # tiny M: don't over-pad
    return max(tm, 128)


@jax.jit
def classifier_forward(feats, feats_mask, params):
    """Pallas equivalent of Classifier.forward. feats_mask is unused (as in torch)."""
    del feats_mask
    w1, b1, w2, b2 = params["w1"], params["b1"], params["w2"], params["b2"]

    B, S, D = feats.shape
    H = w1.shape[1]
    V = w2.shape[1]
    M = B * S

    tm = _pick_tm(M, D)
    G = pl.cdiv(M, tm)
    M_pad = G * tm

    x2d = feats.reshape(M, D).astype(jnp.float32)
    if M_pad != M:
        x2d = jnp.pad(x2d, ((0, M_pad - M), (0, 0)))

    # Orientation of the first layer (static, shape-dependent).
    transposed_first = D < 256
    if transposed_first:
        w1_k = w1.T                       # (H, D)
        b1_k = b1.reshape(1, H).T         # (H, 1)
    else:
        w1_k = w1                         # (D, H)
        b1_k = b1.reshape(1, H)           # (1, H)
    w2t = w2.T                            # (V, H)   (second layer always transposed)
    b2t = b2.reshape(1, V).T              # (V, 1)

    # VMEM budget from the actual lane-padded footprint; capped for v7x (64 MiB).
    lane_D = _round_up(D, 128)
    lane_H = _round_up(H, 128)
    vmem_bytes = (
        2 * tm * lane_D * 4                              # double-buffered feats tile
        + 2 * 8 * tm * 4                                 # double-buffered (1,1,tm) i32 out
        + 2 * 4 * (w1_k.size + w2t.size + b1_k.size + b2t.size)  # resident weights (x2)
        + 2 * tm * lane_H * 4                            # headroom for h / logits
        + (8 << 20))                                     # general headroom
    vmem_limit = int(min(max(vmem_bytes, 16 << 20), 48 << 20))

    cost = pl.CostEstimate(
        flops=2 * M_pad * (D * H + H * V),
        transcendentals=M_pad * H,
        bytes_accessed=M_pad * D * 4 + M_pad * 4 + (D * H + H * V + H + V) * 4,
    )

    # TODO(synk): for large vocabularies (V >> 5) tile W2/b2 over a second
    # "arbitrary" grid axis with running (max, argmax) scratch instead of the
    # unrolled class loop.
    preds = pl.pallas_call(
        functools.partial(_classifier_kernel, transposed_first=transposed_first),
        out_shape=jax.ShapeDtypeStruct((G, 1, tm), jnp.int32),
        grid_spec=pltpu.PrefetchScalarGridSpec(
            num_scalar_prefetch=0,
            grid=(G,),
            in_specs=[
                pl.BlockSpec((tm, D), lambda i: (i, 0)),        # feats tile
                pl.BlockSpec(w1_k.shape, lambda i: (0, 0)),     # W1 (full, resident)
                pl.BlockSpec(b1_k.shape, lambda i: (0, 0)),     # b1
                pl.BlockSpec(w2t.shape, lambda i: (0, 0)),      # W2^T (full, resident)
                pl.BlockSpec(b2t.shape, lambda i: (0, 0)),      # b2^T
            ],
            out_specs=pl.BlockSpec((1, 1, tm), lambda i: (i, 0, 0)),
        ),
        compiler_params=pltpu.CompilerParams(
            dimension_semantics=("parallel",),
            vmem_limit_bytes=vmem_limit,
        ),
        cost_estimate=cost,
    )(x2d, w1_k, b1_k, w2t, b2t)

    return preds.reshape(M_pad)[:M].reshape(B, S)


def init_params(key, feat_dim, vocab_size):
    """Deterministic synthetic init matching nn.Linear shapes (uniform +/- 1/sqrt(fan_in))."""
    hidden = feat_dim // 2
    k1, k2, k3, k4 = jax.random.split(key, 4)
    lim1 = 1.0 / jnp.sqrt(feat_dim)
    lim2 = 1.0 / jnp.sqrt(hidden)
    return {
        "w1": jax.random.uniform(k1, (feat_dim, hidden), jnp.float32, -lim1, lim1),
        "b1": jax.random.uniform(k2, (1, hidden), jnp.float32, -lim1, lim1),
        "w2": jax.random.uniform(k3, (hidden, vocab_size), jnp.float32, -lim2, lim2),
        "b2": jax.random.uniform(k4, (1, vocab_size), jnp.float32, -lim2, lim2),
    }


if __name__ == "__main__":
    LY_VOCAB = ["text", "title", "table", "figure", "list"]  # len == 5
    V = len(LY_VOCAB)
    key = jax.random.PRNGKey(0)

    def run_case(B, S, D):
        kf, kp = jax.random.split(jax.random.fold_in(key, B * 10_000 + S))
        feats = jax.random.normal(kf, (B, S, D), jnp.float32)
        feats_mask = jnp.ones((B, S), jnp.float32)  # unused, mirrors torch signature
        params = init_params(kp, D, V)

        preds = jax.block_until_ready(classifier_forward(feats, feats_mask, params))
        assert preds.shape == (B, S) and preds.dtype == jnp.int32

        # f32 reference; allow flips only on near-ties (MXU vs XLA matmul rounding).
        x2d = feats.reshape(-1, D)
        logits = jnp.tanh(x2d @ params["w1"] + params["b1"]) @ params["w2"] + params["b2"]
        ref = jnp.argmax(logits, axis=-1).astype(jnp.int32)
        srt = jnp.sort(logits, axis=-1)
        gap = srt[:, -1] - srt[:, -2]
        ok = (preds.reshape(-1) == ref) | (gap < 5e-2)
        assert bool(jnp.all(ok)), f"mismatch beyond matmul tie tolerance for case {(B, S, D)}"

    run_case(2, 8, 32)      # tiny shape: tm shrinks to 128 (no 16 -> 512 padding blow-up)
    run_case(2, 384, 64)    # multi-tile: M=768 -> tm=128, grid=(6,) (>=2 steps per v7x TC)
    print("KERNEL_OK")
</pallas_src>

<mosaic_0001>
module attributes {stable_mosaic.version = 11 : i64} {
  func.func @_classifier_kernel(%arg0: i32, %arg1: memref<128x32xf32, #tpu.memory_space<vmem>>, %arg2: memref<16x32xf32, #tpu.memory_space<vmem>>, %arg3: memref<16x1xf32, #tpu.memory_space<vmem>>, %arg4: memref<5x16xf32, #tpu.memory_space<vmem>>, %arg5: memref<5x1xf32, #tpu.memory_space<vmem>>, %arg6: memref<1x1x128xi32, #tpu.memory_space<vmem>>) attributes {dimension_semantics = [#tpu.dimension_semantics<parallel>], iteration_bounds = array<i64: 1>, scalar_prefetch = 0 : i64, scratch_operands = 0 : i64, tpu.core_type = #tpu.core_type<tc>, window_params = [{transform_indices = @transform_0, window_bounds = array<i64: 128, 32>}, {pipeline_mode = #tpu.pipeline_mode<synchronous>, transform_indices = @transform_1, window_bounds = array<i64: 16, 32>}, {pipeline_mode = #tpu.pipeline_mode<synchronous>, transform_indices = @transform_2, window_bounds = array<i64: 16, 1>}, {pipeline_mode = #tpu.pipeline_mode<synchronous>, transform_indices = @transform_3, window_bounds = array<i64: 5, 16>}, {pipeline_mode = #tpu.pipeline_mode<synchronous>, transform_indices = @transform_4, window_bounds = array<i64: 5, 1>}, {transform_indices = @transform_5, window_bounds = array<i64: 1, 1, 128>}]} {
    %c0 = arith.constant 0 : index
    %c0_0 = arith.constant 0 : index
    %0 = vector.load %arg1[%c0, %c0_0] : memref<128x32xf32, #tpu.memory_space<vmem>>, vector<128x32xf32>
    %c0_1 = arith.constant 0 : index
    %c0_2 = arith.constant 0 : index
    %1 = vector.load %arg2[%c0_1, %c0_2] : memref<16x32xf32, #tpu.memory_space<vmem>>, vector<16x32xf32>
    %cst = arith.constant dense<0.000000e+00> : vector<16x128xf32>
    %2 = tpu.matmul %1, %0, %cst {dimension_numbers = #tpu.dot_dimension_numbers<[1], [1], [0], [0], [0, 0, 1, 0], [], []>} : vector<16x32xf32>, vector<128x32xf32>, vector<16x128xf32> -> vector<16x128xf32>
    %c0_3 = arith.constant 0 : index
    %c0_4 = arith.constant 0 : index
    %3 = vector.load %arg3[%c0_3, %c0_4] : memref<16x1xf32, #tpu.memory_space<vmem>>, vector<16x1xf32>
    %4 = vector.broadcast %3 : vector<16x1xf32> to vector<16x128xf32>
    %5 = arith.addf %2, %4 : vector<16x128xf32>
    %6 = math.tanh %5 : vector<16x128xf32>
    %c0_5 = arith.constant 0 : index
    %c0_6 = arith.constant 0 : index
    %7 = vector.load %arg4[%c0_5, %c0_6] : memref<5x16xf32, #tpu.memory_space<vmem>>, vector<5x16xf32>
    %cst_7 = arith.constant dense<0.000000e+00> : vector<5x128xf32>
    %8 = tpu.matmul %7, %6, %cst_7 {dimension_numbers = #tpu.dot_dimension_numbers<[1], [0], [0], [1], [0, 0, 1, 1], [], []>} : vector<5x16xf32>, vector<16x128xf32>, vector<5x128xf32> -> vector<5x128xf32>
    %c0_8 = arith.constant 0 : index
    %c0_9 = arith.constant 0 : index
    %9 = vector.load %arg5[%c0_8, %c0_9] : memref<5x1xf32, #tpu.memory_space<vmem>>, vector<5x1xf32>
    %10 = vector.broadcast %9 : vector<5x1xf32> to vector<5x128xf32>
    %11 = arith.addf %8, %10 : vector<5x128xf32>
    %12 = vector.extract_strided_slice %11 {offsets = [0, 0], sizes = [1, 128], strides = [1, 1]} : vector<5x128xf32> to vector<1x128xf32>
    %c0_i32 = arith.constant 0 : i32
    %13 = vector.broadcast %c0_i32 : i32 to vector<1x128xi32>
    %14 = vector.extract_strided_slice %11 {offsets = [1, 0], sizes = [1, 128], strides = [1, 1]} : vector<5x128xf32> to vector<1x128xf32>
    %15 = arith.cmpf ogt, %14, %12 : vector<1x128xf32>
    %16 = arith.select %15, %14, %12 : vector<1x128xi1>, vector<1x128xf32>
    %c1_i32 = arith.constant 1 : i32
    %17 = vector.broadcast %c1_i32 : i32 to vector<1x128xi32>
    %18 = arith.select %15, %17, %13 : vector<1x128xi1>, vector<1x128xi32>
    %19 = vector.extract_strided_slice %11 {offsets = [2, 0], sizes = [1, 128], strides = [1, 1]} : vector<5x128xf32> to vector<1x128xf32>
    %20 = arith.cmpf ogt, %19, %16 : vector<1x128xf32>
    %21 = arith.select %20, %19, %16 : vector<1x128xi1>, vector<1x128xf32>
    %c2_i32 = arith.constant 2 : i32
    %22 = vector.broadcast %c2_i32 : i32 to vector<1x128xi32>
    %23 = arith.select %20, %22, %18 : vector<1x128xi1>, vector<1x128xi32>
    %24 = vector.extract_strided_slice %11 {offsets = [3, 0], sizes = [1, 128], strides = [1, 1]} : vector<5x128xf32> to vector<1x128xf32>
    %25 = arith.cmpf ogt, %24, %21 : vector<1x128xf32>
    %26 = arith.select %25, %24, %21 : vector<1x128xi1>, vector<1x128xf32>
    %c3_i32 = arith.constant 3 : i32
    %27 = vector.broadcast %c3_i32 : i32 to vector<1x128xi32>
    %28 = arith.select %25, %27, %23 : vector<1x128xi1>, vector<1x128xi32>
    %29 = vector.extract_strided_slice %11 {offsets = [4, 0], sizes = [1, 128], strides = [1, 1]} : vector<5x128xf32> to vector<1x128xf32>
    %30 = arith.cmpf ogt, %29, %26 : vector<1x128xf32>
    %c4_i32 = arith.constant 4 : i32
    %31 = vector.broadcast %c4_i32 : i32 to vector<1x128xi32>
    %32 = arith.select %30, %31, %28 : vector<1x128xi1>, vector<1x128xi32>
    %33 = vector.shape_cast %32 : vector<1x128xi32> to vector<1x1x128xi32>
    %c0_10 = arith.constant 0 : index
    %c0_11 = arith.constant 0 : index
    %c0_12 = arith.constant 0 : index
    %34 = vector.load %arg6[%c0_10, %c0_11, %c0_12] : memref<1x1x128xi32, #tpu.memory_space<vmem>>, vector<1x1x128xi32>
    tpu.vector_store %arg6[%c0_10, %c0_11, %c0_12], %33 {strides = array<i32>} : memref<1x1x128xi32, #tpu.memory_space<vmem>>, vector<1x1x128xi32>,
    return
  }
  func.func @transform_0(%arg0: i32) -> (i32, i32) {
    %c0_i32 = arith.constant 0 : i32
    %c0_i32_0 = arith.constant 0 : i32
    return %arg0, %c0_i32 : i32, i32
  }
  func.func @transform_1(%arg0: i32) -> (i32, i32) {
    %c0_i32 = arith.constant 0 : i32
    %c0_i32_0 = arith.constant 0 : i32
    %c0_i32_1 = arith.constant 0 : i32
    return %c0_i32, %c0_i32_0 : i32, i32
  }
  func.func @transform_2(%arg0: i32) -> (i32, i32) {
    %c0_i32 = arith.constant 0 : i32
    %c0_i32_0 = arith.constant 0 : i32
    %c0_i32_1 = arith.constant 0 : i32
    return %c0_i32, %c0_i32_0 : i32, i32
  }
  func.func @transform_3(%arg0: i32) -> (i32, i32) {
    %c0_i32 = arith.constant 0 : i32
    %c0_i32_0 = arith.constant 0 : i32
    %c0_i32_1 = arith.constant 0 : i32
    return %c0_i32, %c0_i32_0 : i32, i32
  }
  func.func @transform_4(%arg0: i32) -> (i32, i32) {
    %c0_i32 = arith.constant 0 : i32
    %c0_i32_0 = arith.constant 0 : i32
    %c0_i32_1 = arith.constant 0 : i32
    return %c0_i32, %c0_i32_0 : i32, i32
  }
  func.func @transform_5(%arg0: i32) -> (i32, i32, i32) {
    %c0_i32 = arith.constant 0 : i32
    %c0_i32_0 = arith.constant 0 : i32
    %c0_i32_1 = arith.constant 0 : i32
    return %arg0, %c0_i32, %c0_i32_0 : i32, i32, i32
  }
}

</mosaic_0001>

<bundles_post_ra>
// kernel: classifier_forward.1
= control target key start
LH: loop header
LB: loop body
LE: loop exit
PB: predicated region body
PF: predicated region fallthrough
CT: control target
= control target key end

     0   :  { %vm50_vm0 = vcmask 261120   ;;  %v437_v3 = vmov 0   ;;  %v438_v30 = vmov 0.0|0.0   ;;  %vm439_vm2 = vmmov 0   ;;  %s583_s0 = inlined_call_operand.vmem [shape: f32[128,32], index: 0, kind: input, shape index: {}]   ;;  %s584_s1 = inlined_call_operand.vmem [shape: f32[16,32], index: 1, kind: input, shape index: {}]   ;;  %s585_s2 = inlined_call_operand.vmem [shape: f32[16,1], index: 2, kind: input, shape index: {}]   ;;  %s586_s4 = inlined_call_operand.vmem [shape: f32[5,1], index: 4, kind: input, shape index: {}]   ;;  %s587_s3 = inlined_call_operand.vmem [shape: f32[5,16], index: 3, kind: input, shape index: {}]   ;;  %s588_s5 = inlined_call_operand.vmem [shape: s32[1,1,128], index: 5, kind: output, shape index: {}]  }
   0x1   :  { %v20_v0 = vld [vmem:[%s583_s0] sm:$0xff]  ;;  %v21_v1 = vld [vmem:[%s583_s0 + $0x8] sm:$0xff]  ;;  %vm479_vm1 = vmpackc.low %vm50_vm0, %vm50_vm0  ;;  %431 = vset.pattern.permute.xlu0 %v437_v3  ;;  %432 = vset.pattern.permute.xlu1 %v437_v3  ;;  %v440_v31 = vmov 0.0   ;;  %vm189_vm3 = vcmask 130048  }
   0x2   :  { %v376_v4 = vpack.c.bf16 %v21_v1, %v20_v0  ;;  %v22_v5 = vld [vmem:[%s583_s0 + $0x10] sm:$0xff]  ;;  %v23_v6 = vld [vmem:[%s583_s0 + $0x18] sm:$0xff]  ;;  %v36_v8 = vld [vmem:[%s584_s1] sm:$0xff]  ;;  %424 = vmatprep.subr.bf16.mxu1 %v438_v30  ;;  %373 = vmatprep.mubr.msk.f32.mxu1 %vm439_vm2, %v440_v31 }
   0x3   :  { %v382_v7 = vpack.c.bf16 %v23_v6, %v22_v5  ;;  %v24_v9 = vld [vmem:[%s583_s0 + $0x20] sm:$0xff]  ;;  %v25_v10 = vld [vmem:[%s583_s0 + $0x28] sm:$0xff]  ;;  %366 = vmatprep.mubr.msk.f32.mxu0 %vm50_vm0, %v36_v8  ;;  %v26_v14 = vld [vmem:[%s583_s0 + $0x30] sm:$0xff] }
   0x4   :  { %378 = vmatprep.subr.msk.bf16.mxu0 %vm479_vm1, %v376_v4  ;;  %v38_v11 = vld [vmem:[%s585_s2] sm:$0xff]  ;;  %v39_v12 = vld [vmem:[%s585_s2 + $0x8] sm:$0xff]  ;;  %v388_v13 = vpack.c.bf16 %v25_v10, %v24_v9  ;;  %v27_v15 = vld [vmem:[%s583_s0 + $0x38] sm:$0xff] }
   0x5   :  { %381 = vmatpush3.bf16.xpose.msk.msra.mxu0 %vm479_vm1, %v376_v4  ;;  %42 = vperm.xlu0 %431, %v38_v11   ;;  %v394_v16 = vpack.c.bf16 %v27_v15, %v26_v14  ;;  %v28_v17 = vld [vmem:[%s583_s0 + $0x40] sm:$0xff]  ;;  %v29_v18 = vld [vmem:[%s583_s0 + $0x48] sm:$0xff]  ;;  %v30_v20 = vld [vmem:[%s583_s0 + $0x50] sm:$0xff] }
   0x6   :  { %384 = vmatprep.subr.msk.bf16.mxu0 %vm479_vm1, %v382_v7  ;;  %v400_v19 = vpack.c.bf16 %v29_v18, %v28_v17  ;;  %v31_v21 = vld [vmem:[%s583_s0 + $0x58] sm:$0xff]  ;;  %v32_v23 = vld [vmem:[%s583_s0 + $0x60] sm:$0xff]  ;;  %v33_v24 = vld [vmem:[%s583_s0 + $0x68] sm:$0xff] }
   0x7   :  { %v406_v22 = vpack.c.bf16 %v31_v21, %v30_v20  ;;  %v412_v25 = vpack.c.bf16 %v33_v24, %v32_v23  ;;  %v34_v26 = vld [vmem:[%s583_s0 + $0x70] sm:$0xff]  ;;  %v35_v27 = vld [vmem:[%s583_s0 + $0x78] sm:$0xff]  ;;  %v37_v29 = vld [vmem:[%s584_s1 + $0x8] sm:$0xff] }
   0x8   :  { %v418_v28 = vpack.c.bf16 %v35_v27, %v34_v26  ;;  %v183_v32 = vld [vmem:[%s586_s4] sm:$0x1f] }
   0x9   :  { %47 = vperm.xlu0 %431, %v39_v12   ;;  %186 = vperm.xlu1 %432, %v183_v32   ;;  %v182_v42 = vld [vmem:[%s587_s3] sm:$0x1f] }
   0xd   :  { %387 = vmatpush3.bf16.xpose.msk.msra.mxu0 %vm479_vm1, %v382_v7 }
   0xe   :  { %390 = vmatprep.subr.msk.bf16.mxu0 %vm479_vm1, %v388_v13 }
  0x15   :  { %393 = vmatpush3.bf16.xpose.msk.msra.mxu0 %vm479_vm1, %v388_v13 }
  0x16   :  { %396 = vmatprep.subr.msk.bf16.mxu0 %vm479_vm1, %v394_v16 }
  0x1d   :  { %399 = vmatpush3.bf16.xpose.msk.msra.mxu0 %vm479_vm1, %v394_v16 }
  0x1e   :  { %402 = vmatprep.subr.msk.bf16.mxu0 %vm479_vm1, %v400_v19 }
  0x25   :  { %405 = vmatpush3.bf16.xpose.msk.msra.mxu0 %vm479_vm1, %v400_v19 }
  0x26   :  { %408 = vmatprep.subr.msk.bf16.mxu0 %vm479_vm1, %v406_v22 }
  0x2d   :  { %411 = vmatpush3.bf16.xpose.msk.msra.mxu0 %vm479_vm1, %v406_v22 }
  0x2e   :  { %414 = vmatprep.subr.msk.bf16.mxu0 %vm479_vm1, %v412_v25 }
  0x35   :  { %417 = vmatpush3.bf16.xpose.msk.msra.mxu0 %vm479_vm1, %v412_v25 }
  0x36   :  { %420 = vmatprep.subr.msk.bf16.mxu0 %vm479_vm1, %v418_v28 }
  0x3d   :  { %423 = vmatpush3.bf16.xpose.msk.msra.mxu0 %vm479_vm1, %v418_v28 }
  0x44   :  { %367 = vmatmul.mubr.msk.f32.vlgmr.msra.gmra.mrb[0].mxu0 %vm50_vm0, %v37_v29 }
  0x84   :  { %v43_v33 = vpop.permute.xlu0 %42 }
  0x88   :  { %v48_v34 = vpop.permute.xlu0 %47  ;;  %v187_v43 = vpop.permute.xlu1 %186 }
 0x117   :  { %v368_v35 = vpop.f32.mrb[0].mxu0 }
 0x118   :  { %v177_v36 = vadd.f32 %v368_v35, %v48_v34  ;;  %v171_v37 = vpop.f32.mrb[1].mxu0 }
 0x119   :  { %v172_v38 = vadd.f32 %v171_v37, %v43_v33 }
 0x11a   :  { %433 = vtanh.f32 %v177_v36 }
 0x11b   :  { %435 = vtanh.f32 %v172_v38 }
 0x124   :  { %v434_v39 = vpop.eup %433 }
 0x125   :  { %v436_v40 = vpop.eup %435 }
 0x126   :  { %v425_v41 = vpack.c.bf16 %v434_v39, %v436_v40 }
 0x128   :  { %426 = vmatpush3.bf16.msra.mxu1 %v425_v41 }
 0x12b   :  { %374 = vmatmul.mubr.msk.f32.vlgmr.msra.gmra.mrb[0].mxu1 %vm189_vm3, %v182_v42 }
 0x1fe   :  { %v259_v44 = vpop.f32.mrb[0].mxu1 }
 0x1ff   :  { %v260_v45 = vadd.f32 %v259_v44, %v187_v43  ;;  %v375_v46 = vpop.f32.mrb[1].mxu1 }
 0x201   :  { %v264_v47 = vrot.slane %v260_v45, 7 }
 0x203   :  { %vm266_vm4 = vcmp.gt.f32.partialorder %v260_v45, %v264_v47 }
 0x204   :  { %v267_v48 = vsel %vm266_vm4, %v260_v45, %v264_v47  ;;  %v268_v49 = vsel %vm266_vm4, 1, %v437_v3 }
 0x205   :  { %v270_v50 = vrot.slane %v267_v48, 7  ;;  %v274_v51 = vrot.slane %v268_v49, 7 }
 0x207   :  { %vm272_vm5 = vcmp.gt.f32.partialorder %v260_v45, %v270_v50 }
 0x208   :  { %v273_v52 = vsel %vm272_vm5, %v260_v45, %v270_v50  ;;  %v275_v53 = vsel %vm272_vm5, 2, %v274_v51 }
 0x209   :  { %v277_v54 = vrot.slane %v273_v52, 7  ;;  %v281_v55 = vrot.slane %v275_v53, 7 }
 0x20b   :  { %vm279_vm6 = vcmp.gt.f32.partialorder %v260_v45, %v277_v54 }
 0x20c   :  { %v280_v56 = vsel %vm279_vm6, %v260_v45, %v277_v54  ;;  %v282_v57 = vsel %vm279_vm6, 3, %v281_v55 }
 0x20d   :  { %v284_v58 = vrot.slane %v280_v56, 7  ;;  %v287_v59 = vrot.slane %v282_v57, 7 }
 0x20f   :  { %vm286_vm7 = vcmp.gt.f32.partialorder %v260_v45, %v284_v58 }
 0x210   :  { %v288_v60 = vsel %vm286_vm7, 4, %v287_v59 }
 0x211   :  { %289 = vst [vmem:[%s588_s5 - $0x4] sm:$0x10] %v288_v60 }

</bundles_post_ra>
